<compile_context>
chip_gen: v7x
topology: tpu7x:2x2x1
jax: 0.10.0
libtpu: 0.0.40
codegen_flags: <defaults>
</compile_context>

<pallas_src>
import jax
import jax.numpy as jnp
from jax.experimental import pallas as pl
from jax.experimental.pallas import tpu as pltpu

_LANES = 128
_SUBLANES = 8
_CHUNK_ROWS = 512                 # 512x128 f32 = 256 KiB per in-kernel temporary
_TARGET_BLOCK_BYTES = 8 << 20     # per-input DMA block target (review: 4-8 MiB)


def _chip_budget():
    """Returns (grid-sharding TensorCores, physical VMEM bytes per core)."""
    vmem_cap = 64 << 20            # conservative default (v7x per-TC)
    cores = 1
    try:
        vmem_cap = int(pltpu.get_tpu_info().vmem_capacity_bytes)
    except Exception:
        pass
    try:
        kind = jax.devices()[0].device_kind.lower()
        # Megacore parts: 2 TensorCores behind one device.
        if any(tag in kind for tag in ("v7", "v4", "v5p")):
            cores = 2
    except Exception:
        pass
    return cores, vmem_cap


def _make_mse_kernel(rows, tile_rows, tiles_per_split, chunk_rows):
    """rows / tile_rows / tiles_per_split / chunk_rows are Python ints."""
    assert tile_rows % chunk_rows == 0 and chunk_rows % _SUBLANES == 0
    chunks_per_tile = tile_rows // chunk_rows
    sub_blocks = chunk_rows // _SUBLANES

    def kernel(x_ref, y_ref, out_ref):
        c = pl.program_id(0)          # split (one per TensorCore on multi-TC chips)
        i = pl.program_id(1)          # reduction over tiles ("arbitrary")

        @pl.when(i == 0)
        def _():
            out_ref[...] = jnp.zeros_like(out_ref)

        # Unclamped logical start row of this tile.  For the (at most one)
        # redundant clamped tile of an uneven 2-way split this is >= rows,
        # so every chunk takes the masked path and contributes zero.
        row0 = (c * tiles_per_split + i) * tile_rows

        def chunk_body(j, carry):
            r = pl.multiple_of(j * chunk_rows, chunk_rows)
            xs = x_ref[pl.ds(r, chunk_rows), :].astype(jnp.float32)
            ys = y_ref[pl.ds(r, chunk_rows), :].astype(jnp.float32)
            d = xs - ys
            sq = d * d
            crow0 = row0 + j * chunk_rows

            # Steady state: no masking work at all (keeps the kernel DMA-bound
            # even for bf16/fp8 inputs).
            @pl.when(crow0 + chunk_rows <= rows)
            def _():
                out_ref[...] += sq.reshape(
                    sub_blocks, _SUBLANES, _LANES).sum(axis=0, keepdims=True)

            # Tail / redundant chunk only: mask rows past the real array
            # (stale VMEM beyond the partial DMA, or the clamped extra tile).
            @pl.when(crow0 + chunk_rows > rows)
            def _():
                ridx = crow0 + jax.lax.broadcasted_iota(
                    jnp.int32, (chunk_rows, _LANES), 0)
                sq_m = jnp.where(ridx < rows, sq, 0.0)
                out_ref[...] += sq_m.reshape(
                    sub_blocks, _SUBLANES, _LANES).sum(axis=0, keepdims=True)

            return carry

        jax.lax.fori_loop(0, chunks_per_tile, chunk_body, 0)

    return kernel


def mse_loss(x: jax.Array, y: jax.Array) -> jax.Array:
    """Equivalent of torch.nn.MSELoss()(x, y): mean((x - y)**2) over all elems."""
    assert x.shape == y.shape, "MSELoss requires matching shapes"
    n = x.size
    assert n > 0

    xf = x.reshape(-1)
    yf = y.reshape(-1)

    n_main = (n // _LANES) * _LANES       # 128-aligned prefix handled by the kernel
    rows = n_main // _LANES

    if rows < _SUBLANES:
        # Tiny input (< 1024 elements): a kernel launch is not worth it.
        d = xf.astype(jnp.float32) - yf.astype(jnp.float32)
        return jnp.sum(d * d) / jnp.float32(n)

    # < 128-element tail handled with plain jnp -- no full-array jnp.pad copy.
    tail_sum = jnp.float32(0.0)
    if n_main != n:
        dt = xf[n_main:].astype(jnp.float32) - yf[n_main:].astype(jnp.float32)
        tail_sum = jnp.sum(dt * dt)
        xf = xf[:n_main]   # prefix slice only on the rare non-128-aligned path
        yf = yf[:n_main]

    x2d = xf.reshape(rows, _LANES)
    y2d = yf.reshape(rows, _LANES)

    itemsize = max(x.dtype.itemsize, y.dtype.itemsize)
    cores, vmem_cap = _chip_budget()

    # Per-input DMA block: ~8 MiB, capped so 2 inputs x 2 buffers <= vmem/2.
    block_budget = min(_TARGET_BLOCK_BYTES, vmem_cap // 8)
    budget_rows = max(_SUBLANES, block_budget // (_LANES * itemsize))

    if rows >= _CHUNK_ROWS:
        tile_rows = max(_CHUNK_ROWS,
                        (min(budget_rows, rows) // _CHUNK_ROWS) * _CHUNK_ROWS)
        chunk_rows = _CHUNK_ROWS
    else:
        tile_rows = (rows // _SUBLANES) * _SUBLANES   # single small tile
        chunk_rows = tile_rows

    total_tiles = pl.cdiv(rows, tile_rows)
    splits = max(1, min(cores, total_tiles))          # 1 on v5e/v6e, 2 on v7x
    tiles_per_split = pl.cdiv(total_tiles, splits)
    last_tile = total_tiles - 1

    def in_index_map(c, i):
        # Clamp the (at most one) redundant tile of an uneven split to a valid
        # block; the kernel's row mask zeroes its contribution.
        return (jnp.minimum(c * tiles_per_split + i, last_tile), 0)

    block_bytes = tile_rows * _LANES * itemsize
    # 2 inputs x double-buffered + ~8 MiB slack for chunk-sized temporaries,
    # kept well under physical VMEM (64 MiB/TC on v7x, 128 MiB on v5e/v6e).
    vmem_limit = int(min(max(4 * block_bytes + (8 << 20), 16 << 20),
                         (vmem_cap * 3) // 4))

    bytes_in = n_main * (x.dtype.itemsize + y.dtype.itemsize)
    cost = pl.CostEstimate(
        flops=3 * n_main,
        transcendentals=0,
        bytes_accessed=bytes_in + splits * _SUBLANES * _LANES * 4,
    )

    partials = pl.pallas_call(
        _make_mse_kernel(rows, tile_rows, tiles_per_split, chunk_rows),
        out_shape=jax.ShapeDtypeStruct((splits, _SUBLANES, _LANES), jnp.float32),
        grid=(splits, tiles_per_split),
        in_specs=[
            pl.BlockSpec((tile_rows, _LANES), in_index_map),
            pl.BlockSpec((tile_rows, _LANES), in_index_map),
        ],
        out_specs=pl.BlockSpec((1, _SUBLANES, _LANES), lambda c, i: (c, 0, 0)),
        compiler_params=pltpu.CompilerParams(
            dimension_semantics=("parallel", "arbitrary"),
            vmem_limit_bytes=vmem_limit,
        ),
        cost_estimate=cost,
    )(x2d, y2d)

    # Single cross-lane/sublane reduce + mean, done once outside the kernel.
    return (jnp.sum(partials) + tail_sum) / jnp.float32(n)


if __name__ == "__main__":
    key = jax.random.PRNGKey(0)
    k1, k2, k3, k4, k5, k6 = jax.random.split(key, 6)

    # Primary case: small NCHW tensors (Input, Output), as in the PyTorch module.
    inp = jax.random.normal(k1, (2, 4, 16, 16), dtype=jnp.float32)
    out = jax.random.normal(k2, (2, 4, 16, 16), dtype=jnp.float32)
    loss = mse_loss(inp, out)
    jax.block_until_ready(loss)
    ref = jnp.mean((inp - out) ** 2)
    assert jnp.allclose(loss, ref, rtol=1e-5, atol=1e-6), (loss, ref)

    # Non-128-aligned element count: exercises the no-pad tail path and the
    # in-kernel masked last tile.
    a = jax.random.normal(k3, (3, 5, 7, 11), dtype=jnp.float32)   # 1155 elems
    b = jax.random.normal(k4, (3, 5, 7, 11), dtype=jnp.float32)
    loss2 = mse_loss(a, b)
    jax.block_until_ready(loss2)
    ref2 = jnp.mean((a - b) ** 2)
    assert jnp.allclose(loss2, ref2, rtol=1e-5, atol=1e-6), (loss2, ref2)

    # bf16 inputs, multi-chunk tile + partial last block: exercises the
    # dtype-aware tiling, the chunked inner loop, and the masked tail chunks.
    c_ = jax.random.normal(k5, (8, 4, 64, 66), dtype=jnp.bfloat16)
    d_ = jax.random.normal(k6, (8, 4, 64, 66), dtype=jnp.bfloat16)
    loss3 = mse_loss(c_, d_)
    jax.block_until_ready(loss3)
    ref3 = jnp.mean((c_.astype(jnp.float32) - d_.astype(jnp.float32)) ** 2)
    assert jnp.allclose(loss3, ref3, rtol=1e-4, atol=1e-5), (loss3, ref3)

    print("KERNEL_OK")
</pallas_src>

<mosaic_0001>
module attributes {stable_mosaic.version = 11 : i64} {
  func.func @kernel(%arg0: i32, %arg1: i32, %arg2: memref<16x128xf32, #tpu.memory_space<vmem>>, %arg3: memref<16x128xf32, #tpu.memory_space<vmem>>, %arg4: memref<1x8x128xf32, #tpu.memory_space<vmem>>) attributes {dimension_semantics = [#tpu.dimension_semantics<parallel>, #tpu.dimension_semantics<arbitrary>], iteration_bounds = array<i64: 1, 1>, scalar_prefetch = 0 : i64, scratch_operands = 0 : i64, tpu.core_type = #tpu.core_type<tc>, window_params = [{transform_indices = @transform_0, window_bounds = array<i64: 16, 128>}, {transform_indices = @transform_1, window_bounds = array<i64: 16, 128>}, {transform_indices = @transform_2, window_bounds = array<i64: 1, 8, 128>}]} {
    %c0_i32 = arith.constant 0 : i32
    %0 = arith.cmpi eq, %arg1, %c0_i32 : i32
    %1 = arith.extui %0 : i1 to i32
    %c0_i32_0 = arith.constant 0 : i32
    %2 = arith.cmpi ne, %1, %c0_i32_0 : i32
    scf.if %2 {
      %cst = arith.constant 0.000000e+00 : f32
      %24 = vector.broadcast %cst : f32 to vector<1x8x128xf32>
      %c0_12 = arith.constant 0 : index
      %c0_13 = arith.constant 0 : index
      %c0_14 = arith.constant 0 : index
      %25 = vector.load %arg4[%c0_12, %c0_13, %c0_14] : memref<1x8x128xf32, #tpu.memory_space<vmem>>, vector<1x8x128xf32>
      tpu.vector_store %arg4[%c0_12, %c0_13, %c0_14], %24 {strides = array<i32>} : memref<1x8x128xf32, #tpu.memory_space<vmem>>, vector<1x8x128xf32>,
    } else {
    }
    %c1_i32 = arith.constant 1 : i32
    %3 = arith.muli %arg0, %c1_i32 : i32
    %4 = arith.addi %3, %arg1 : i32
    %c16_i32 = arith.constant 16 : i32
    %5 = arith.muli %4, %c16_i32 : i32
    %c0_i32_1 = arith.constant 0 : i32
    %c16_i32_2 = arith.constant 16 : i32
    %6 = arith.muli %c0_i32_1, %c16_i32_2 : i32
    %7 = tpu.assume_multiple %6, 16 : i32
    %8 = arith.index_cast %7 : i32 to index
    %c0 = arith.constant 0 : index
    %9 = vector.load %arg2[%8, %c0] : memref<16x128xf32, #tpu.memory_space<vmem>>, vector<16x128xf32>
    %10 = arith.index_cast %7 : i32 to index
    %c0_3 = arith.constant 0 : index
    %11 = vector.load %arg3[%10, %c0_3] : memref<16x128xf32, #tpu.memory_space<vmem>>, vector<16x128xf32>
    %12 = arith.subf %9, %11 : vector<16x128xf32>
    %13 = arith.mulf %12, %12 : vector<16x128xf32>
    %c16_i32_4 = arith.constant 16 : i32
    %14 = arith.muli %c0_i32_1, %c16_i32_4 : i32
    %15 = arith.addi %5, %14 : i32
    %c16_i32_5 = arith.constant 16 : i32
    %16 = arith.addi %15, %c16_i32_5 : i32
    %c16_i32_6 = arith.constant 16 : i32
    %17 = arith.cmpi sle, %16, %c16_i32_6 : i32
    %18 = arith.extui %17 : i1 to i32
    %c0_i32_7 = arith.constant 0 : i32
    %19 = arith.cmpi ne, %18, %c0_i32_7 : i32
    scf.if %19 {
      %c0_12 = arith.constant 0 : index
      %c0_13 = arith.constant 0 : index
      %c0_14 = arith.constant 0 : index
      %24 = vector.load %arg4[%c0_12, %c0_13, %c0_14] : memref<1x8x128xf32, #tpu.memory_space<vmem>>, vector<1x8x128xf32>
      %25 = vector.shape_cast %13 : vector<16x128xf32> to vector<2x8x128xf32>
      %cst = arith.constant dense<0.000000e+00> : vector<8x128xf32>
      %26 = vector.multi_reduction <add>, %25, %cst [0] : vector<2x8x128xf32> to vector<8x128xf32>
      %27 = vector.shape_cast %26 : vector<8x128xf32> to vector<1x8x128xf32>
      %28 = arith.addf %24, %27 : vector<1x8x128xf32>
      %c0_15 = arith.constant 0 : index
      %c0_16 = arith.constant 0 : index
      %c0_17 = arith.constant 0 : index
      %29 = vector.load %arg4[%c0_15, %c0_16, %c0_17] : memref<1x8x128xf32, #tpu.memory_space<vmem>>, vector<1x8x128xf32>
      tpu.vector_store %arg4[%c0_15, %c0_16, %c0_17], %28 {strides = array<i32>} : memref<1x8x128xf32, #tpu.memory_space<vmem>>, vector<1x8x128xf32>,
    } else {
    }
    %c16_i32_8 = arith.constant 16 : i32
    %20 = arith.addi %15, %c16_i32_8 : i32
    %c16_i32_9 = arith.constant 16 : i32
    %21 = arith.cmpi sgt, %20, %c16_i32_9 : i32
    %22 = arith.extui %21 : i1 to i32
    %c0_i32_10 = arith.constant 0 : i32
    %23 = arith.cmpi ne, %22, %c0_i32_10 : i32
    scf.if %23 {
      %24 = tpu.iota {dimensions = array<i32: 0>} : vector<16x128xi32>
      %25 = vector.broadcast %15 : i32 to vector<16x128xi32>
      %26 = arith.addi %25, %24 : vector<16x128xi32>
      %c16_i32_12 = arith.constant 16 : i32
      %27 = vector.broadcast %c16_i32_12 : i32 to vector<16x128xi32>
      %28 = arith.cmpi slt, %26, %27 : vector<16x128xi32>
      %cst = arith.constant 0.000000e+00 : f32
      %29 = vector.broadcast %cst : f32 to vector<16x128xf32>
      %30 = arith.select %28, %13, %29 : vector<16x128xi1>, vector<16x128xf32>
      %c0_13 = arith.constant 0 : index
      %c0_14 = arith.constant 0 : index
      %c0_15 = arith.constant 0 : index
      %31 = vector.load %arg4[%c0_13, %c0_14, %c0_15] : memref<1x8x128xf32, #tpu.memory_space<vmem>>, vector<1x8x128xf32>
      %32 = vector.shape_cast %30 : vector<16x128xf32> to vector<2x8x128xf32>
      %cst_16 = arith.constant dense<0.000000e+00> : vector<8x128xf32>
      %33 = vector.multi_reduction <add>, %32, %cst_16 [0] : vector<2x8x128xf32> to vector<8x128xf32>
      %34 = vector.shape_cast %33 : vector<8x128xf32> to vector<1x8x128xf32>
      %35 = arith.addf %31, %34 : vector<1x8x128xf32>
      %c0_17 = arith.constant 0 : index
      %c0_18 = arith.constant 0 : index
      %c0_19 = arith.constant 0 : index
      %36 = vector.load %arg4[%c0_17, %c0_18, %c0_19] : memref<1x8x128xf32, #tpu.memory_space<vmem>>, vector<1x8x128xf32>
      tpu.vector_store %arg4[%c0_17, %c0_18, %c0_19], %35 {strides = array<i32>} : memref<1x8x128xf32, #tpu.memory_space<vmem>>, vector<1x8x128xf32>,
    } else {
    }
    %c1_i32_11 = arith.constant 1 : i32
    return
  }
  func.func @transform_0(%arg0: i32, %arg1: i32) -> (i32, i32) {
    %c1_i32 = arith.constant 1 : i32
    %0 = arith.muli %arg0, %c1_i32 : i32
    %1 = arith.addi %0, %arg1 : i32
    %c0_i32 = arith.constant 0 : i32
    %2 = arith.minsi %1, %c0_i32 : i32
    %c0_i32_0 = arith.constant 0 : i32
    %c0_i32_1 = arith.constant 0 : i32
    return %2, %c0_i32_0 : i32, i32
  }
  func.func @transform_1(%arg0: i32, %arg1: i32) -> (i32, i32) {
    %c1_i32 = arith.constant 1 : i32
    %0 = arith.muli %arg0, %c1_i32 : i32
    %1 = arith.addi %0, %arg1 : i32
    %c0_i32 = arith.constant 0 : i32
    %2 = arith.minsi %1, %c0_i32 : i32
    %c0_i32_0 = arith.constant 0 : i32
    %c0_i32_1 = arith.constant 0 : i32
    return %2, %c0_i32_0 : i32, i32
  }
  func.func @transform_2(%arg0: i32, %arg1: i32) -> (i32, i32, i32) {
    %c0_i32 = arith.constant 0 : i32
    %c0_i32_0 = arith.constant 0 : i32
    %c0_i32_1 = arith.constant 0 : i32
    return %arg0, %c0_i32, %c0_i32_0 : i32, i32, i32
  }
}

</mosaic_0001>

<bundles_post_ra>
// kernel: tpu_custom_call.1
= control target key start
LH: loop header
LB: loop body
LE: loop exit
PB: predicated region body
PF: predicated region fallthrough
CT: control target
= control target key end

     0   :  { %7 = vsyncpa [#allocation3], 0  ;;  %s256_s0 = inlined_call_operand.hbm [shape: f32[16,128], index: 0, kind: input, shape index: {}]   ;;  %s257_s1 = inlined_call_operand.hbm [shape: f32[16,128], index: 1, kind: input, shape index: {}]   ;;  %s258_s2 = inlined_call_operand.hbm [shape: f32[1,8,128], index: 2, kind: output, shape index: {}]  }
   0x1   :  { %8 = vsyncpa [#allocation6], 0 }
   0x2   :  { %9 = vsyncpa [#allocation4], 0  ;;  %s200_s9 = smov [#allocation2]   ;;  %s128_s13 = scalar_lea.hbm %s256_s0, 256 }
   0x3   :  { %s21_s10 = sshll.u32 %s200_s9, 4  ;;  %p129_p0 = scmp.ne.s32.totalorder %s256_s0, %s128_s13  ;;  %s22_s10 = int_to_ptr.vmem [resolvable:$true] %s21_s10 }
   0x4   :  { %p132_p1 = scmp.lt.u32.totalorder %s128_s13, %s256_s0 }
   0x6   :  { %p134_p2 = pnand %p132_p1, %p129_p0 }
   0x8   :  { %137 = shalt.err (!%p134_p2)
}
   0x9   :  { %s138_s18 = scalar_lea.vmem %s22_s10, 256  ;;  %p143_p4 = scmp.lt.s32.totalorder %s22_s10, %s22_s10 }
   0xa   :  { %p139_p3 = scmp.ne.s32.totalorder %s22_s10, %s138_s18  ;;  %p144_p5 = scmp.lt.s32.totalorder %s138_s18, %s138_s18 }
   0xc   :  { %p145_p6 = por %p144_p5, %p143_p4 }
   0xe   :  { %p146_p7 = pnand %p145_p6, %p139_p3 }
  0x10   :  { %149 = shalt.err (!%p146_p7)
}
  0x11   :  { %s201_s19 = smov 128   ;;  %s202_s20 = smov 8  }
  0x12   :  { %27 = dma.hbm_to_vmem [thread:$0]  %s256_s0, 256, %s22_s10, [#allocation3], %s201_s19, %s201_s19, %s202_s20  }
  0x13   :  { %s203_s23 = smov [#allocation5]   ;;  %s150_s27 = scalar_lea.hbm %s257_s1, 256 }
  0x14   :  { %s39_s24 = sshll.u32 %s203_s23, 4  ;;  %p151_p8 = scmp.ne.s32.totalorder %s257_s1, %s150_s27  ;;  %s40_s24 = int_to_ptr.vmem [resolvable:$true] %s39_s24 }
  0x15   :  { %p154_p9 = scmp.lt.u32.totalorder %s150_s27, %s257_s1 }
  0x17   :  { %p156_p10 = pnand %p154_p9, %p151_p8 }
  0x19   :  { %159 = shalt.err (!%p156_p10)
}
  0x1a   :  { %s160_s4 = scalar_lea.vmem %s40_s24, 256  ;;  %p165_p12 = scmp.lt.s32.totalorder %s40_s24, %s40_s24 }
  0x1b   :  { %p161_p11 = scmp.ne.s32.totalorder %s40_s24, %s160_s4  ;;  %p166_p13 = scmp.lt.s32.totalorder %s160_s4, %s160_s4 }
  0x1d   :  { %p167_p0 = por %p166_p13, %p165_p12 }
  0x1f   :  { %p168_p1 = pnand %p167_p0, %p161_p11 }
  0x21   :  { %171 = shalt.err (!%p168_p1)
}
  0x22   :  { %45 = dma.hbm_to_vmem [thread:$0]  %s257_s1, 256, %s40_s24, [#allocation6], %s201_s19, %s201_s19, %s202_s20  }
  0x23   :  { %194 = dma.done.wait [#allocation3], 256  }
  0x24   :  { %195 = vsyncadd [#allocation3], 4294967040 }
  0x25   :  { %196 = dma.done.wait [#allocation6], 256  }
  0x26   :  { %197 = vsyncadd [#allocation6], 4294967040  ;;  %v67_v0 = vld [vmem:[#allocation2] sm:$0xff]  ;;  %v68_v1 = vld [vmem:[#allocation2 + $0x8] sm:$0xff]  ;;  %s204_s6 = smov [#allocation7]  }
  0x27   :  { %v69_v2 = vld [vmem:[#allocation5] sm:$0xff]  ;;  %v70_v3 = vld [vmem:[#allocation5 + $0x8] sm:$0xff]  ;;  %s108_s7 = sshll.u32 %s204_s6, 4  ;;  %s109_s7 = int_to_ptr.vmem [resolvable:$true] %s108_s7 }
  0x28   :  { %v71_v4 = vsub.f32 %v67_v0, %v69_v2  ;;  %v72_v5 = vsub.f32 %v68_v1, %v70_v3  ;;  %s172_s8 = scalar_lea.vmem %s109_s7, 128  ;;  %p177_p3 = scmp.lt.s32.totalorder %s109_s7, %s109_s7 }
  0x29   :  { %p173_p2 = scmp.ne.s32.totalorder %s109_s7, %s172_s8  ;;  %p178_p4 = scmp.lt.s32.totalorder %s172_s8, %s172_s8 }
  0x2a   :  { %v73_v6 = vmul.f32 %v71_v4, %v71_v4  ;;  %v74_v7 = vmul.f32 %v72_v5, %v72_v5 }
  0x2b   :  { %p179_p5 = por %p178_p4, %p177_p3 }
  0x2c   :  { %v81_v8 = vadd.f32 %v74_v7, %v73_v6 }
  0x2d   :  { %p180_p6 = pnand %p179_p5, %p173_p2 }
  0x2e   :  { %83 = vst [vmem:[#allocation7] sm:$0xff] %v81_v8 }
  0x2f   :  { %183 = shalt.err (!%p180_p6)
}
  0x30   :  { %s184_s10 = scalar_lea.hbm %s258_s2, 128 }
  0x31   :  { %p185_p7 = scmp.ne.s32.totalorder %s258_s2, %s184_s10  ;;  %p188_p8 = scmp.lt.u32.totalorder %s184_s10, %s258_s2 }
  0x33   :  { %p190_p9 = pnand %p188_p8, %p185_p7 }
  0x35   :  { %193 = shalt.err (!%p190_p9)
}
  0x36   :  { %111 = dma.vmem_to_hbm [thread:$0]  %s109_s7, 128, %s258_s2, [#allocation4]  }
  0x37   :  { %198 = dma.done.wait [#allocation4], 128  }
  0x38   :  { %199 = vsyncadd [#allocation4], 4294967168 }
  0x39   :  { %115 = vsyncpa [#allocation3], 1 }
  0x3a   :  { %116 = vsyncpa [#allocation6], 1 }
  0x3b   :  { %117 = vsyncpa [#allocation4], 1 }

</bundles_post_ra>
